<compile_context>
chip_gen: v7x
topology: tpu7x:2x2x1
jax: 0.10.0
libtpu: 0.0.40
codegen_flags: <defaults>
</compile_context>

<pallas_src>
import functools

import jax
import jax.numpy as jnp
from jax import lax
from jax.experimental import pallas as pl
from jax.experimental.pallas import tpu as pltpu

NUM_HEADS = 8

# Contract the last axis of both operands: x[(m,k)] . w[(n,k)] -> (m,n),
# i.e. x @ w.T with no in-kernel transpose (MXU consumes the RHS natively).
_CONTRACT_LAST = (((1,), (1,)), ((), ()))


def _nt_matmul(x, w):
    return lax.dot_general(x, w, _CONTRACT_LAST,
                           preferred_element_type=jnp.float32)


# ---------------------------------------------------------------------------
# Fused cross-attention kernel: one batch element per grid step.
# ---------------------------------------------------------------------------
def _cross_attention_kernel(q_ref, kv_ref, wq_ref, wkv_ref, wo_ref, bo_ref,
                            o_ref, *, num_heads, scale):
    dim_q = wq_ref.shape[0]
    hd = dim_q // num_heads

    q_in = q_ref[0]        # (Lq, dim_q)
    kv_in = kv_ref[0]      # (Lkv, dim_kv)

    # Projections (weights stay resident in VMEM across the whole grid).
    # Attention scale folded into q: cheaper than scaling the (Lq, Lkv) scores.
    qp = _nt_matmul(q_in, wq_ref[...]) * scale          # (Lq, dim_q)
    kvp = _nt_matmul(kv_in, wkv_ref[...])               # (Lkv, 2*dim_q) fused K|V
    kp = kvp[:, :dim_q]                                 # (Lkv, dim_q)
    vp = kvp[:, dim_q:]                                 # (Lkv, dim_q)

    # Per-head attention, statically unrolled (num_heads == 8).  Head slices
    # are static lane slices of the in-VMEM projections; the result is
    # reassembled lane-dense as (Lq, dim_q).
    head_outs = []
    for h in range(num_heads):
        lo = h * hd
        qh = qp[:, lo:lo + hd]                          # (Lq, hd)
        kh = kp[:, lo:lo + hd]                          # (Lkv, hd)
        vh = vp[:, lo:lo + hd]                          # (Lkv, hd)

        s = _nt_matmul(qh, kh)                          # (Lq, Lkv) = qh @ kh.T
        m = jnp.max(s, axis=-1, keepdims=True)
        p = jnp.exp(s - m)
        inv = pl.reciprocal(jnp.sum(p, axis=-1, keepdims=True), approx=True)
        p = p * inv
        head_outs.append(
            jnp.dot(p, vh, preferred_element_type=jnp.float32))  # (Lq, hd)

    attn = jnp.concatenate(head_outs, axis=-1)          # (Lq, dim_q) lane-dense

    # Output projection (+ bias), stored as a single lane-dense slab.
    out = _nt_matmul(attn, wo_ref[...]) + bo_ref[...]
    o_ref[0] = out.astype(o_ref.dtype)


# ---------------------------------------------------------------------------
# Wrapper around pallas_call.
# ---------------------------------------------------------------------------
def cross_attention_forward(params, q, kv):
    B, Lq, dim_q = q.shape
    _, Lkv, dim_kv = kv.shape
    assert dim_q % NUM_HEADS == 0
    hd = dim_q // NUM_HEADS
    scale = float(hd) ** -0.5

    # Fuse K and V projection weights into one (2*dim_q, dim_kv) matrix so the
    # kernel does a single matmul over kv.
    wkv = jnp.concatenate([params["wk"], params["wv"]], axis=0)
    bo = params["bo"].reshape(1, dim_q)

    kernel = functools.partial(
        _cross_attention_kernel, num_heads=NUM_HEADS, scale=scale)

    return pl.pallas_call(
        kernel,
        out_shape=jax.ShapeDtypeStruct((B, Lq, dim_q), q.dtype),
        grid=(B,),
        in_specs=[
            pl.BlockSpec((1, Lq, dim_q), lambda b: (b, 0, 0)),     # q  (per batch)
            pl.BlockSpec((1, Lkv, dim_kv), lambda b: (b, 0, 0)),   # kv (per batch)
            pl.BlockSpec((dim_q, dim_q), lambda b: (0, 0)),        # wq   (VMEM-resident)
            pl.BlockSpec((2 * dim_q, dim_kv), lambda b: (0, 0)),   # wk|wv (VMEM-resident)
            pl.BlockSpec((dim_q, dim_q), lambda b: (0, 0)),        # wo   (VMEM-resident)
            pl.BlockSpec((1, dim_q), lambda b: (0, 0)),            # bo   (VMEM-resident)
        ],
        out_specs=pl.BlockSpec((1, Lq, dim_q), lambda b: (b, 0, 0)),
        compiler_params=pltpu.CompilerParams(
            # Batch steps are independent -> megacore-shardable (v7x 2 TCs).
            dimension_semantics=("parallel",)),
    )(q, kv, params["wq"], wkv, params["wo"], bo)


# ---------------------------------------------------------------------------
# Pure-JAX reference for a quiet correctness check.
# ---------------------------------------------------------------------------
def reference_forward(params, q, kv):
    B, Lq, dim_q = q.shape
    hd = dim_q // NUM_HEADS
    scale = float(hd) ** -0.5
    qp = q @ params["wq"].T
    kp = kv @ params["wk"].T
    vp = kv @ params["wv"].T

    def split(x):
        b, l, d = x.shape
        return jnp.transpose(x.reshape(b, l, NUM_HEADS, d // NUM_HEADS),
                             (0, 2, 1, 3))

    qh, kh, vh = split(qp), split(kp), split(vp)
    s = jnp.einsum("bhqd,bhkd->bhqk", qh, kh) * scale
    p = jax.nn.softmax(s, axis=-1)
    o = jnp.einsum("bhqk,bhkd->bhqd", p, vh)
    o = jnp.transpose(o, (0, 2, 1, 3)).reshape(B, Lq, dim_q)
    return o @ params["wo"].T + params["bo"]


if __name__ == "__main__":
    B, Lq, Lkv = 2, 16, 8
    dim_q, dim_kv = 32, 24  # dim_q divisible by 8

    key = jax.random.PRNGKey(0)
    k1, k2, k3, k4, k5, k6, k7 = jax.random.split(key, 7)

    # Deterministic synthetic parameters (PyTorch Linear convention: (out, in)).
    params = {
        "wq": jax.random.normal(k1, (dim_q, dim_q), jnp.float32) * 0.05,
        "wk": jax.random.normal(k2, (dim_q, dim_kv), jnp.float32) * 0.05,
        "wv": jax.random.normal(k3, (dim_q, dim_kv), jnp.float32) * 0.05,
        "wo": jax.random.normal(k4, (dim_q, dim_q), jnp.float32) * 0.05,
        "bo": jax.random.normal(k5, (dim_q,), jnp.float32) * 0.05,
    }

    q = jax.random.normal(k6, (B, Lq, dim_q), jnp.float32)
    kv = jax.random.normal(k7, (B, Lkv, dim_kv), jnp.float32)

    out = jax.block_until_ready(cross_attention_forward(params, q, kv))
    ref = reference_forward(params, q, kv)

    assert out.shape == (B, Lq, dim_q)
    # Tolerance covers the EUP approximate-reciprocal softmax normalization
    # (~1e-4-level relative error); all matmuls accumulate in f32.
    assert jnp.allclose(out, ref, atol=2e-3, rtol=2e-3), \
        float(jnp.max(jnp.abs(out - ref)))

    print("KERNEL_OK")
</pallas_src>

<mosaic_0001>
module attributes {stable_mosaic.version = 11 : i64} {
  func.func @_cross_attention_kernel(%arg0: i32, %arg1: memref<1x16x32xf32, #tpu.memory_space<vmem>>, %arg2: memref<1x8x24xf32, #tpu.memory_space<vmem>>, %arg3: memref<32x32xf32, #tpu.memory_space<vmem>>, %arg4: memref<64x24xf32, #tpu.memory_space<vmem>>, %arg5: memref<32x32xf32, #tpu.memory_space<vmem>>, %arg6: memref<1x32xf32, #tpu.memory_space<vmem>>, %arg7: memref<1x16x32xf32, #tpu.memory_space<vmem>>) attributes {dimension_semantics = [#tpu.dimension_semantics<parallel>], iteration_bounds = array<i64: 2>, scalar_prefetch = 0 : i64, scratch_operands = 0 : i64, tpu.core_type = #tpu.core_type<tc>, window_params = [{transform_indices = @transform_0, window_bounds = array<i64: 1, 16, 32>}, {transform_indices = @transform_1, window_bounds = array<i64: 1, 8, 24>}, {pipeline_mode = #tpu.pipeline_mode<synchronous>, transform_indices = @transform_2, window_bounds = array<i64: 32, 32>}, {pipeline_mode = #tpu.pipeline_mode<synchronous>, transform_indices = @transform_3, window_bounds = array<i64: 64, 24>}, {pipeline_mode = #tpu.pipeline_mode<synchronous>, transform_indices = @transform_4, window_bounds = array<i64: 32, 32>}, {pipeline_mode = #tpu.pipeline_mode<synchronous>, transform_indices = @transform_5, window_bounds = array<i64: 1, 32>}, {transform_indices = @transform_6, window_bounds = array<i64: 1, 16, 32>}]} {
    %c0 = arith.constant 0 : index
    %c0_0 = arith.constant 0 : index
    %c0_1 = arith.constant 0 : index
    %0 = vector.load %arg1[%c0, %c0_0, %c0_1] : memref<1x16x32xf32, #tpu.memory_space<vmem>>, vector<1x16x32xf32>
    %1 = vector.shape_cast %0 : vector<1x16x32xf32> to vector<16x32xf32>
    %c0_2 = arith.constant 0 : index
    %c0_3 = arith.constant 0 : index
    %c0_4 = arith.constant 0 : index
    %2 = vector.load %arg2[%c0_2, %c0_3, %c0_4] : memref<1x8x24xf32, #tpu.memory_space<vmem>>, vector<1x8x24xf32>
    %3 = vector.shape_cast %2 : vector<1x8x24xf32> to vector<8x24xf32>
    %c0_5 = arith.constant 0 : index
    %c0_6 = arith.constant 0 : index
    %4 = vector.load %arg3[%c0_5, %c0_6] : memref<32x32xf32, #tpu.memory_space<vmem>>, vector<32x32xf32>
    %cst = arith.constant dense<0.000000e+00> : vector<16x32xf32>
    %5 = tpu.matmul %1, %4, %cst {dimension_numbers = #tpu.dot_dimension_numbers<[1], [1], [0], [0], [0, 0, 1, 0], [], []>} : vector<16x32xf32>, vector<32x32xf32>, vector<16x32xf32> -> vector<16x32xf32>
    %cst_7 = arith.constant 5.000000e-01 : f32
    %6 = vector.broadcast %cst_7 : f32 to vector<16x32xf32>
    %7 = arith.mulf %5, %6 : vector<16x32xf32>
    %c0_8 = arith.constant 0 : index
    %c0_9 = arith.constant 0 : index
    %8 = vector.load %arg4[%c0_8, %c0_9] : memref<64x24xf32, #tpu.memory_space<vmem>>, vector<64x24xf32>
    %cst_10 = arith.constant dense<0.000000e+00> : vector<8x64xf32>
    %9 = tpu.matmul %3, %8, %cst_10 {dimension_numbers = #tpu.dot_dimension_numbers<[1], [1], [0], [0], [0, 0, 1, 0], [], []>} : vector<8x24xf32>, vector<64x24xf32>, vector<8x64xf32> -> vector<8x64xf32>
    %10 = vector.extract_strided_slice %9 {offsets = [0, 0], sizes = [8, 32], strides = [1, 1]} : vector<8x64xf32> to vector<8x32xf32>
    %11 = vector.extract_strided_slice %9 {offsets = [0, 32], sizes = [8, 32], strides = [1, 1]} : vector<8x64xf32> to vector<8x32xf32>
    %12 = vector.extract_strided_slice %7 {offsets = [0, 0], sizes = [16, 4], strides = [1, 1]} : vector<16x32xf32> to vector<16x4xf32>
    %13 = vector.extract_strided_slice %10 {offsets = [0, 0], sizes = [8, 4], strides = [1, 1]} : vector<8x32xf32> to vector<8x4xf32>
    %14 = vector.extract_strided_slice %11 {offsets = [0, 0], sizes = [8, 4], strides = [1, 1]} : vector<8x32xf32> to vector<8x4xf32>
    %cst_11 = arith.constant dense<0.000000e+00> : vector<16x8xf32>
    %15 = tpu.matmul %12, %13, %cst_11 {dimension_numbers = #tpu.dot_dimension_numbers<[1], [1], [0], [0], [0, 0, 1, 0], [], []>} : vector<16x4xf32>, vector<8x4xf32>, vector<16x8xf32> -> vector<16x8xf32>
    %cst_12 = arith.constant dense<0xFF800000> : vector<16xf32>
    %16 = vector.multi_reduction <maximumf>, %15, %cst_12 [1] : vector<16x8xf32> to vector<16xf32>
    %17 = vector.shape_cast %16 : vector<16xf32> to vector<16x1xf32>
    %18 = vector.broadcast %17 : vector<16x1xf32> to vector<16x8xf32>
    %19 = arith.subf %15, %18 : vector<16x8xf32>
    %20 = math.exp %19 : vector<16x8xf32>
    %cst_13 = arith.constant dense<0.000000e+00> : vector<16xf32>
    %21 = vector.multi_reduction <add>, %20, %cst_13 [1] : vector<16x8xf32> to vector<16xf32>
    %22 = vector.shape_cast %21 : vector<16xf32> to vector<16x1xf32>
    %23 = tpu.reciprocal %22 {approx = true} : vector<16x1xf32> -> vector<16x1xf32>
    %24 = vector.broadcast %23 : vector<16x1xf32> to vector<16x8xf32>
    %25 = arith.mulf %20, %24 : vector<16x8xf32>
    %cst_14 = arith.constant dense<0.000000e+00> : vector<16x4xf32>
    %26 = tpu.matmul %25, %14, %cst_14 {dimension_numbers = #tpu.dot_dimension_numbers<[1], [0], [0], [1], [0, 0, 1, 1], [], []>} : vector<16x8xf32>, vector<8x4xf32>, vector<16x4xf32> -> vector<16x4xf32>
    %27 = vector.extract_strided_slice %7 {offsets = [0, 4], sizes = [16, 4], strides = [1, 1]} : vector<16x32xf32> to vector<16x4xf32>
    %28 = vector.extract_strided_slice %10 {offsets = [0, 4], sizes = [8, 4], strides = [1, 1]} : vector<8x32xf32> to vector<8x4xf32>
    %29 = vector.extract_strided_slice %11 {offsets = [0, 4], sizes = [8, 4], strides = [1, 1]} : vector<8x32xf32> to vector<8x4xf32>
    %cst_15 = arith.constant dense<0.000000e+00> : vector<16x8xf32>
    %30 = tpu.matmul %27, %28, %cst_15 {dimension_numbers = #tpu.dot_dimension_numbers<[1], [1], [0], [0], [0, 0, 1, 0], [], []>} : vector<16x4xf32>, vector<8x4xf32>, vector<16x8xf32> -> vector<16x8xf32>
    %cst_16 = arith.constant dense<0xFF800000> : vector<16xf32>
    %31 = vector.multi_reduction <maximumf>, %30, %cst_16 [1] : vector<16x8xf32> to vector<16xf32>
    %32 = vector.shape_cast %31 : vector<16xf32> to vector<16x1xf32>
    %33 = vector.broadcast %32 : vector<16x1xf32> to vector<16x8xf32>
    %34 = arith.subf %30, %33 : vector<16x8xf32>
    %35 = math.exp %34 : vector<16x8xf32>
    %cst_17 = arith.constant dense<0.000000e+00> : vector<16xf32>
    %36 = vector.multi_reduction <add>, %35, %cst_17 [1] : vector<16x8xf32> to vector<16xf32>
    %37 = vector.shape_cast %36 : vector<16xf32> to vector<16x1xf32>
    %38 = tpu.reciprocal %37 {approx = true} : vector<16x1xf32> -> vector<16x1xf32>
    %39 = vector.broadcast %38 : vector<16x1xf32> to vector<16x8xf32>
    %40 = arith.mulf %35, %39 : vector<16x8xf32>
    %cst_18 = arith.constant dense<0.000000e+00> : vector<16x4xf32>
    %41 = tpu.matmul %40, %29, %cst_18 {dimension_numbers = #tpu.dot_dimension_numbers<[1], [0], [0], [1], [0, 0, 1, 1], [], []>} : vector<16x8xf32>, vector<8x4xf32>, vector<16x4xf32> -> vector<16x4xf32>
    %42 = vector.extract_strided_slice %7 {offsets = [0, 8], sizes = [16, 4], strides = [1, 1]} : vector<16x32xf32> to vector<16x4xf32>
    %43 = vector.extract_strided_slice %10 {offsets = [0, 8], sizes = [8, 4], strides = [1, 1]} : vector<8x32xf32> to vector<8x4xf32>
    %44 = vector.extract_strided_slice %11 {offsets = [0, 8], sizes = [8, 4], strides = [1, 1]} : vector<8x32xf32> to vector<8x4xf32>
    %cst_19 = arith.constant dense<0.000000e+00> : vector<16x8xf32>
    %45 = tpu.matmul %42, %43, %cst_19 {dimension_numbers = #tpu.dot_dimension_numbers<[1], [1], [0], [0], [0, 0, 1, 0], [], []>} : vector<16x4xf32>, vector<8x4xf32>, vector<16x8xf32> -> vector<16x8xf32>
    %cst_20 = arith.constant dense<0xFF800000> : vector<16xf32>
    %46 = vector.multi_reduction <maximumf>, %45, %cst_20 [1] : vector<16x8xf32> to vector<16xf32>
    %47 = vector.shape_cast %46 : vector<16xf32> to vector<16x1xf32>
    %48 = vector.broadcast %47 : vector<16x1xf32> to vector<16x8xf32>
    %49 = arith.subf %45, %48 : vector<16x8xf32>
    %50 = math.exp %49 : vector<16x8xf32>
    %cst_21 = arith.constant dense<0.000000e+00> : vector<16xf32>
    %51 = vector.multi_reduction <add>, %50, %cst_21 [1] : vector<16x8xf32> to vector<16xf32>
    %52 = vector.shape_cast %51 : vector<16xf32> to vector<16x1xf32>
    %53 = tpu.reciprocal %52 {approx = true} : vector<16x1xf32> -> vector<16x1xf32>
    %54 = vector.broadcast %53 : vector<16x1xf32> to vector<16x8xf32>
    %55 = arith.mulf %50, %54 : vector<16x8xf32>
    %cst_22 = arith.constant dense<0.000000e+00> : vector<16x4xf32>
    %56 = tpu.matmul %55, %44, %cst_22 {dimension_numbers = #tpu.dot_dimension_numbers<[1], [0], [0], [1], [0, 0, 1, 1], [], []>} : vector<16x8xf32>, vector<8x4xf32>, vector<16x4xf32> -> vector<16x4xf32>
    %57 = vector.extract_strided_slice %7 {offsets = [0, 12], sizes = [16, 4], strides = [1, 1]} : vector<16x32xf32> to vector<16x4xf32>
    %58 = vector.extract_strided_slice %10 {offsets = [0, 12], sizes = [8, 4], strides = [1, 1]} : vector<8x32xf32> to vector<8x4xf32>
    %59 = vector.extract_strided_slice %11 {offsets = [0, 12], sizes = [8, 4], strides = [1, 1]} : vector<8x32xf32> to vector<8x4xf32>
    %cst_23 = arith.constant dense<0.000000e+00> : vector<16x8xf32>
    %60 = tpu.matmul %57, %58, %cst_23 {dimension_numbers = #tpu.dot_dimension_numbers<[1], [1], [0], [0], [0, 0, 1, 0], [], []>} : vector<16x4xf32>, vector<8x4xf32>, vector<16x8xf32> -> vector<16x8xf32>
    %cst_24 = arith.constant dense<0xFF800000> : vector<16xf32>
    %61 = vector.multi_reduction <maximumf>, %60, %cst_24 [1] : vector<16x8xf32> to vector<16xf32>
    %62 = vector.shape_cast %61 : vector<16xf32> to vector<16x1xf32>
    %63 = vector.broadcast %62 : vector<16x1xf32> to vector<16x8xf32>
    %64 = arith.subf %60, %63 : vector<16x8xf32>
    %65 = math.exp %64 : vector<16x8xf32>
    %cst_25 = arith.constant dense<0.000000e+00> : vector<16xf32>
    %66 = vector.multi_reduction <add>, %65, %cst_25 [1] : vector<16x8xf32> to vector<16xf32>
    %67 = vector.shape_cast %66 : vector<16xf32> to vector<16x1xf32>
    %68 = tpu.reciprocal %67 {approx = true} : vector<16x1xf32> -> vector<16x1xf32>
    %69 = vector.broadcast %68 : vector<16x1xf32> to vector<16x8xf32>
    %70 = arith.mulf %65, %69 : vector<16x8xf32>
    %cst_26 = arith.constant dense<0.000000e+00> : vector<16x4xf32>
    %71 = tpu.matmul %70, %59, %cst_26 {dimension_numbers = #tpu.dot_dimension_numbers<[1], [0], [0], [1], [0, 0, 1, 1], [], []>} : vector<16x8xf32>, vector<8x4xf32>, vector<16x4xf32> -> vector<16x4xf32>
    %72 = vector.extract_strided_slice %7 {offsets = [0, 16], sizes = [16, 4], strides = [1, 1]} : vector<16x32xf32> to vector<16x4xf32>
    %73 = vector.extract_strided_slice %10 {offsets = [0, 16], sizes = [8, 4], strides = [1, 1]} : vector<8x32xf32> to vector<8x4xf32>
    %74 = vector.extract_strided_slice %11 {offsets = [0, 16], sizes = [8, 4], strides = [1, 1]} : vector<8x32xf32> to vector<8x4xf32>
    %cst_27 = arith.constant dense<0.000000e+00> : vector<16x8xf32>
    %75 = tpu.matmul %72, %73, %cst_27 {dimension_numbers = #tpu.dot_dimension_numbers<[1], [1], [0], [0], [0, 0, 1, 0], [], []>} : vector<16x4xf32>, vector<8x4xf32>, vector<16x8xf32> -> vector<16x8xf32>
    %cst_28 = arith.constant dense<0xFF800000> : vector<16xf32>
    %76 = vector.multi_reduction <maximumf>, %75, %cst_28 [1] : vector<16x8xf32> to vector<16xf32>
    %77 = vector.shape_cast %76 : vector<16xf32> to vector<16x1xf32>
    %78 = vector.broadcast %77 : vector<16x1xf32> to vector<16x8xf32>
    %79 = arith.subf %75, %78 : vector<16x8xf32>
    %80 = math.exp %79 : vector<16x8xf32>
    %cst_29 = arith.constant dense<0.000000e+00> : vector<16xf32>
    %81 = vector.multi_reduction <add>, %80, %cst_29 [1] : vector<16x8xf32> to vector<16xf32>
    %82 = vector.shape_cast %81 : vector<16xf32> to vector<16x1xf32>
    %83 = tpu.reciprocal %82 {approx = true} : vector<16x1xf32> -> vector<16x1xf32>
    %84 = vector.broadcast %83 : vector<16x1xf32> to vector<16x8xf32>
    %85 = arith.mulf %80, %84 : vector<16x8xf32>
    %cst_30 = arith.constant dense<0.000000e+00> : vector<16x4xf32>
    %86 = tpu.matmul %85, %74, %cst_30 {dimension_numbers = #tpu.dot_dimension_numbers<[1], [0], [0], [1], [0, 0, 1, 1], [], []>} : vector<16x8xf32>, vector<8x4xf32>, vector<16x4xf32> -> vector<16x4xf32>
    %87 = vector.extract_strided_slice %7 {offsets = [0, 20], sizes = [16, 4], strides = [1, 1]} : vector<16x32xf32> to vector<16x4xf32>
    %88 = vector.extract_strided_slice %10 {offsets = [0, 20], sizes = [8, 4], strides = [1, 1]} : vector<8x32xf32> to vector<8x4xf32>
    %89 = vector.extract_strided_slice %11 {offsets = [0, 20], sizes = [8, 4], strides = [1, 1]} : vector<8x32xf32> to vector<8x4xf32>
    %cst_31 = arith.constant dense<0.000000e+00> : vector<16x8xf32>
    %90 = tpu.matmul %87, %88, %cst_31 {dimension_numbers = #tpu.dot_dimension_numbers<[1], [1], [0], [0], [0, 0, 1, 0], [], []>} : vector<16x4xf32>, vector<8x4xf32>, vector<16x8xf32> -> vector<16x8xf32>
    %cst_32 = arith.constant dense<0xFF800000> : vector<16xf32>
    %91 = vector.multi_reduction <maximumf>, %90, %cst_32 [1] : vector<16x8xf32> to vector<16xf32>
    %92 = vector.shape_cast %91 : vector<16xf32> to vector<16x1xf32>
    %93 = vector.broadcast %92 : vector<16x1xf32> to vector<16x8xf32>
    %94 = arith.subf %90, %93 : vector<16x8xf32>
    %95 = math.exp %94 : vector<16x8xf32>
    %cst_33 = arith.constant dense<0.000000e+00> : vector<16xf32>
    %96 = vector.multi_reduction <add>, %95, %cst_33 [1] : vector<16x8xf32> to vector<16xf32>
    %97 = vector.shape_cast %96 : vector<16xf32> to vector<16x1xf32>
    %98 = tpu.reciprocal %97 {approx = true} : vector<16x1xf32> -> vector<16x1xf32>
    %99 = vector.broadcast %98 : vector<16x1xf32> to vector<16x8xf32>
    %100 = arith.mulf %95, %99 : vector<16x8xf32>
    %cst_34 = arith.constant dense<0.000000e+00> : vector<16x4xf32>
    %101 = tpu.matmul %100, %89, %cst_34 {dimension_numbers = #tpu.dot_dimension_numbers<[1], [0], [0], [1], [0, 0, 1, 1], [], []>} : vector<16x8xf32>, vector<8x4xf32>, vector<16x4xf32> -> vector<16x4xf32>
    %102 = vector.extract_strided_slice %7 {offsets = [0, 24], sizes = [16, 4], strides = [1, 1]} : vector<16x32xf32> to vector<16x4xf32>
    %103 = vector.extract_strided_slice %10 {offsets = [0, 24], sizes = [8, 4], strides = [1, 1]} : vector<8x32xf32> to vector<8x4xf32>
    %104 = vector.extract_strided_slice %11 {offsets = [0, 24], sizes = [8, 4], strides = [1, 1]} : vector<8x32xf32> to vector<8x4xf32>
    %cst_35 = arith.constant dense<0.000000e+00> : vector<16x8xf32>
    %105 = tpu.matmul %102, %103, %cst_35 {dimension_numbers = #tpu.dot_dimension_numbers<[1], [1], [0], [0], [0, 0, 1, 0], [], []>} : vector<16x4xf32>, vector<8x4xf32>, vector<16x8xf32> -> vector<16x8xf32>
    %cst_36 = arith.constant dense<0xFF800000> : vector<16xf32>
    %106 = vector.multi_reduction <maximumf>, %105, %cst_36 [1] : vector<16x8xf32> to vector<16xf32>
    %107 = vector.shape_cast %106 : vector<16xf32> to vector<16x1xf32>
    %108 = vector.broadcast %107 : vector<16x1xf32> to vector<16x8xf32>
    %109 = arith.subf %105, %108 : vector<16x8xf32>
    %110 = math.exp %109 : vector<16x8xf32>
    %cst_37 = arith.constant dense<0.000000e+00> : vector<16xf32>
    %111 = vector.multi_reduction <add>, %110, %cst_37 [1] : vector<16x8xf32> to vector<16xf32>
    %112 = vector.shape_cast %111 : vector<16xf32> to vector<16x1xf32>
    %113 = tpu.reciprocal %112 {approx = true} : vector<16x1xf32> -> vector<16x1xf32>
    %114 = vector.broadcast %113 : vector<16x1xf32> to vector<16x8xf32>
    %115 = arith.mulf %110, %114 : vector<16x8xf32>
    %cst_38 = arith.constant dense<0.000000e+00> : vector<16x4xf32>
    %116 = tpu.matmul %115, %104, %cst_38 {dimension_numbers = #tpu.dot_dimension_numbers<[1], [0], [0], [1], [0, 0, 1, 1], [], []>} : vector<16x8xf32>, vector<8x4xf32>, vector<16x4xf32> -> vector<16x4xf32>
    %117 = vector.extract_strided_slice %7 {offsets = [0, 28], sizes = [16, 4], strides = [1, 1]} : vector<16x32xf32> to vector<16x4xf32>
    %118 = vector.extract_strided_slice %10 {offsets = [0, 28], sizes = [8, 4], strides = [1, 1]} : vector<8x32xf32> to vector<8x4xf32>
    %119 = vector.extract_strided_slice %11 {offsets = [0, 28], sizes = [8, 4], strides = [1, 1]} : vector<8x32xf32> to vector<8x4xf32>
    %cst_39 = arith.constant dense<0.000000e+00> : vector<16x8xf32>
    %120 = tpu.matmul %117, %118, %cst_39 {dimension_numbers = #tpu.dot_dimension_numbers<[1], [1], [0], [0], [0, 0, 1, 0], [], []>} : vector<16x4xf32>, vector<8x4xf32>, vector<16x8xf32> -> vector<16x8xf32>
    %cst_40 = arith.constant dense<0xFF800000> : vector<16xf32>
    %121 = vector.multi_reduction <maximumf>, %120, %cst_40 [1] : vector<16x8xf32> to vector<16xf32>
    %122 = vector.shape_cast %121 : vector<16xf32> to vector<16x1xf32>
    %123 = vector.broadcast %122 : vector<16x1xf32> to vector<16x8xf32>
    %124 = arith.subf %120, %123 : vector<16x8xf32>
    %125 = math.exp %124 : vector<16x8xf32>
    %cst_41 = arith.constant dense<0.000000e+00> : vector<16xf32>
    %126 = vector.multi_reduction <add>, %125, %cst_41 [1] : vector<16x8xf32> to vector<16xf32>
    %127 = vector.shape_cast %126 : vector<16xf32> to vector<16x1xf32>
    %128 = tpu.reciprocal %127 {approx = true} : vector<16x1xf32> -> vector<16x1xf32>
    %129 = vector.broadcast %128 : vector<16x1xf32> to vector<16x8xf32>
    %130 = arith.mulf %125, %129 : vector<16x8xf32>
    %cst_42 = arith.constant dense<0.000000e+00> : vector<16x4xf32>
    %131 = tpu.matmul %130, %119, %cst_42 {dimension_numbers = #tpu.dot_dimension_numbers<[1], [0], [0], [1], [0, 0, 1, 1], [], []>} : vector<16x8xf32>, vector<8x4xf32>, vector<16x4xf32> -> vector<16x4xf32>
    %132 = tpu.concatenate %26, %41, %56, %71, %86, %101, %116, %131 in 1 : vector<16x4xf32>, vector<16x4xf32>, vector<16x4xf32>, vector<16x4xf32>, vector<16x4xf32>, vector<16x4xf32>, vector<16x4xf32>, vector<16x4xf32> -> vector<16x32xf32>
    %c0_43 = arith.constant 0 : index
    %c0_44 = arith.constant 0 : index
    %133 = vector.load %arg5[%c0_43, %c0_44] : memref<32x32xf32, #tpu.memory_space<vmem>>, vector<32x32xf32>
    %cst_45 = arith.constant dense<0.000000e+00> : vector<16x32xf32>
    %134 = tpu.matmul %132, %133, %cst_45 {dimension_numbers = #tpu.dot_dimension_numbers<[1], [1], [0], [0], [0, 0, 1, 0], [], []>} : vector<16x32xf32>, vector<32x32xf32>, vector<16x32xf32> -> vector<16x32xf32>
    %c0_46 = arith.constant 0 : index
    %c0_47 = arith.constant 0 : index
    %135 = vector.load %arg6[%c0_46, %c0_47] : memref<1x32xf32, #tpu.memory_space<vmem>>, vector<1x32xf32>
    %136 = vector.broadcast %135 : vector<1x32xf32> to vector<16x32xf32>
    %137 = arith.addf %134, %136 : vector<16x32xf32>
    %c0_48 = arith.constant 0 : index
    %c0_49 = arith.constant 0 : index
    %c0_50 = arith.constant 0 : index
    %138 = vector.load %arg7[%c0_48, %c0_49, %c0_50] : memref<1x16x32xf32, #tpu.memory_space<vmem>>, vector<1x16x32xf32>
    %139 = vector.shape_cast %138 : vector<1x16x32xf32> to vector<16x32xf32>
    %140 = vector.shape_cast %137 : vector<16x32xf32> to vector<1x16x32xf32>
    tpu.vector_store %arg7[%c0_48, %c0_49, %c0_50], %140 {strides = array<i32>} : memref<1x16x32xf32, #tpu.memory_space<vmem>>, vector<1x16x32xf32>,
    return
  }
  func.func @transform_0(%arg0: i32) -> (i32, i32, i32) {
    %c0_i32 = arith.constant 0 : i32
    %c0_i32_0 = arith.constant 0 : i32
    %c0_i32_1 = arith.constant 0 : i32
    return %arg0, %c0_i32, %c0_i32_0 : i32, i32, i32
  }
  func.func @transform_1(%arg0: i32) -> (i32, i32, i32) {
    %c0_i32 = arith.constant 0 : i32
    %c0_i32_0 = arith.constant 0 : i32
    %c0_i32_1 = arith.constant 0 : i32
    return %arg0, %c0_i32, %c0_i32_0 : i32, i32, i32
  }
  func.func @transform_2(%arg0: i32) -> (i32, i32) {
    %c0_i32 = arith.constant 0 : i32
    %c0_i32_0 = arith.constant 0 : i32
    %c0_i32_1 = arith.constant 0 : i32
    return %c0_i32, %c0_i32_0 : i32, i32
  }
  func.func @transform_3(%arg0: i32) -> (i32, i32) {
    %c0_i32 = arith.constant 0 : i32
    %c0_i32_0 = arith.constant 0 : i32
    %c0_i32_1 = arith.constant 0 : i32
    return %c0_i32, %c0_i32_0 : i32, i32
  }
  func.func @transform_4(%arg0: i32) -> (i32, i32) {
    %c0_i32 = arith.constant 0 : i32
    %c0_i32_0 = arith.constant 0 : i32
    %c0_i32_1 = arith.constant 0 : i32
    return %c0_i32, %c0_i32_0 : i32, i32
  }
  func.func @transform_5(%arg0: i32) -> (i32, i32) {
    %c0_i32 = arith.constant 0 : i32
    %c0_i32_0 = arith.constant 0 : i32
    %c0_i32_1 = arith.constant 0 : i32
    return %c0_i32, %c0_i32_0 : i32, i32
  }
  func.func @transform_6(%arg0: i32) -> (i32, i32, i32) {
    %c0_i32 = arith.constant 0 : i32
    %c0_i32_0 = arith.constant 0 : i32
    %c0_i32_1 = arith.constant 0 : i32
    return %arg0, %c0_i32, %c0_i32_0 : i32, i32, i32
  }
}

</mosaic_0001>

<bundles_post_ra>
// kernel: tpu_custom_call.1
= control target key start
LH: loop header
LB: loop body
LE: loop exit
PB: predicated region body
PF: predicated region fallthrough
CT: control target
= control target key end

     0   :  { %11 = vsyncpa [#allocation3], 0  ;;  %s3420_s0 = inlined_call_operand.vmem [shape: f32[2,16,32], index: 0, kind: input, shape index: {}]   ;;  %s3421_s1 = inlined_call_operand.hbm [shape: f32[2,8,24], index: 1, kind: input, shape index: {}]   ;;  %s3422_s2 = inlined_call_operand.vmem [shape: f32[32,32], index: 2, kind: input, shape index: {}]   ;;  %s3423_s3 = inlined_call_operand.vmem [shape: f32[64,24], index: 3, kind: input, shape index: {}]   ;;  %s3424_s4 = inlined_call_operand.vmem [shape: f32[32,32], index: 4, kind: input, shape index: {}]   ;;  %s3425_s5 = inlined_call_operand.vmem [shape: f32[1,32], index: 5, kind: input, shape index: {}]   ;;  %s3426_s6 = inlined_call_operand.hbm [shape: f32[2,16,32], index: 6, kind: output, shape index: {}]  }
   0x1   :  { %13 = vsyncpa [#allocation3 + $0x1], 0 }
   0x2   :  { %14 = vsyncpa [#allocation4], 0 }
   0x3   :  { %16 = vsyncpa [#allocation4 + $0x1], 0  ;;  %s2924_s21 = smov 0   ;;  %s2926_s22 = smov 0  }
   0x4   :  { %s2928_s23 = smov 0   ;;  %s2930_s24 = smov 0  }
   0x5 LB: > { %s2945_s25 = sadd.s32 4294967295, %s2859_s24   ;;  %s2318_s26 = sadd.s32 4294967294, %s2859_s24   ;;  %s2859_s24 = sphi %s2930_s24, %s3445_s24   ;;  %s2855_s23 = sphi %s2928_s23, %s3444_s23   ;;  %s2851_s22 = sphi %s2926_s22, %s3443_s22   ;;  %s2847_s21 = sphi %s2924_s21, %s3442_s21  }
   0x6   : > { %s2949_s27 = sadd.s32 1, %s2859_s24   ;;  %s55_s28 = sadd.s32 1, %s2855_s23 }
   0x7   : > { %s52_s29 = ssub.s32 %s2859_s24, %s2949_s27  ;;  %p62_p0 = scmp.ne.s32.totalorder %s2855_s23, %s2851_s22 }
   0x8   : > { %p53_p1 = scmp.eq.s32.totalorder %s52_s29, 0  ;;  %p63_p2 = scmp.eq.s32.totalorder %s2859_s24, 0 }
   0x9   : > { %p68_p3 = scmp.ne.s32.totalorder %s2851_s22, %s2847_s21  ;;  %p69_p4 = scmp.eq.s32.totalorder %s2945_s25, 0 }
   0xa   : > { %s2961_s30 = scalar_select %p53_p1, %s2855_s23, %s55_s28  }
   0xb   : > { %p2963_p5 = por %p63_p2, %p62_p0  ;;  %p2967_p6 = por %p69_p4, %p68_p3 }
   0xc   : > { %p176_p7 = scmp.eq.s32.totalorder %s2945_s25, 1  ;;  %p182_p8 = scmp.eq.s32.totalorder %s2318_s26, 1 }
   0xd   : > { %p2639_p10 = scmp.lt.s32.totalorder %s2859_s24, 2  ;;  %s222_s11 = sand.u32 1, %s2855_s23  }
   0xe   : > { %p2974_p11 = por %p176_p7, %p62_p0  ;;  %p2978_p12 = por %p182_p8, %p68_p3 }
   0xf   : > { %s2322_s12 = sshll.u32 %s2859_s24, 7  ;;  %s2321_s13 = sshll.u32 %s222_s11, 3 }
  0x10   : > { %s3430_s9 = scalar_select %p2974_p11, 1, 0 }
  0x11   : > { %s3431_s10 = scalar_select %p2978_p12, 1, 0 }
  0x12   : > { %s2987_s16 = scalar_lea.hbm %s3421_s1, %s2322_s12  ;;  %s226_s17 = scalar_lea.vmem [#allocation2], %s2321_s13 }
  0x13   : > { %s233_s18 = sshll.u32 %s226_s17, 4  ;;  %p2991_p13 = pnand %p2639_p10, %p2963_p5  ;;  %s2995_s18 = int_to_ptr.vmem [resolvable:$true] %s233_s18 }
  0x14   : > { %s223_s20 = scalar_lea.sflag [#allocation3], %s222_s11  ;;  %s2763_s26 = scalar_lea.hbm %s2987_s16, 128 }
  0x15   : > { %p2764_p2 = scmp.ne.s32.totalorder %s2987_s16, %s2763_s26  ;;  %p2765_p3 = pneg %p2991_p13 }
  0x16   : > { %s2768_s7 = scalar_lea.hbm %s3421_s1, 256  ;;  %p2769_p5 = scmp.lt.u32.totalorder %s2987_s16, %s3421_s1 }
  0x17   : > { %p2766_p4 = pnand %p2765_p3, %p2764_p2  ;;  %p2770_p8 = scmp.lt.u32.totalorder %s2768_s7, %s2763_s26 }
  0x18   : > { %p2772_p9 = scmp.lt.u32.totalorder %s2763_s26, %s2987_s16 }
  0x19   : > { %p2767_p7 = pneg %p2766_p4  ;;  %p2771_p10 = por %p2770_p8, %p2769_p5 }
  0x1b   : > { %p2773_p0 = por %p2772_p9, %p2771_p10 }
  0x1d   : > { %p2774_p1 = pnand %p2773_p0, %p2767_p7 }
  0x1f   : > { %2777 = shalt.err (!%p2774_p1)
}
  0x20   : > { %s2778_s11 = scalar_lea.vmem %s2995_s18, 128  ;;  %s2861_s14 = smov [#allocation2]  }
  0x21   : > { %p2779_p2 = scmp.ne.s32.totalorder %s2995_s18, %s2778_s11  ;;  %s2783_s15 = sshll.u32 %s2861_s14, 4  ;;  %s2784_s15 = int_to_ptr.vmem [resolvable:$false] %s2783_s15 }
  0x22   : > { %s2785_s17 = scalar_lea.vmem %s2784_s15, 256  ;;  %p2786_p11 = scmp.lt.s32.totalorder %s2995_s18, %s2784_s15 }
  0x23   : > { %p2781_p4 = pnand %p2779_p2, %p2765_p3  ;;  %p2787_p5 = scmp.lt.s32.totalorder %s2785_s17, %s2778_s11 }
  0x25   : > { %p2782_p12 = pneg %p2781_p4  ;;  %p2788_p8 = por %p2787_p5, %p2786_p11 }
  0x27   : > { %p2789_p9 = pnand %p2788_p8, %p2782_p12 }
  0x29   : > { %2792 = shalt.err (!%p2789_p9)
}
  0x2a   : > { %2634 = dma.hbm_to_vmem [thread:$0]  (!%p2991_p13), %s2987_s16, 128, %s2995_s18, %s223_s20  }
  0x2b   : > { %p3433_p0 = scmp.lt.s32.totalorder %s2859_s24, 3  ;;  %p3434_p1 = scmp.ge.s32.totalorder %s2859_s24, 1 }
  0x2d   : > { %p239_p3 = pnand %p3434_p1, %p3433_p0 }
  0x2e   : > { %s3029_s26 = sand.u32 (!%p239_p3), 1, %s2851_s22  }
  0x2f   : > { %242 = sbr.rel (%p239_p3) target bundleno = 2115 (0x843), region = 44  ;;  %s2324_s28 = sshll.u32 (!%p239_p3), %s3029_s26, 3 }
  0x30   : > { %s245_s29 = scalar_lea.sflag (!%p239_p3), [#allocation3], %s3029_s26  ;;  %s3033_s7 = scalar_lea.vmem (!%p239_p3), [#allocation2], %s2324_s28 }
  0x36   : > { %2838 = dma.done.wait (%p2967_p6), %s245_s29, 128  }
  0x37   : > { %2840 = vsyncadd (%p2967_p6), %s245_s29, 4294967168  ;;  %p282_p11 = scmp.lt.s32.totalorder %s2945_s25, 1  ;;  %v2862_v0 = vmov 0.0|0.0   ;;  %vm2863_vm0 = vmmov 0   ;;  %v2864_v1 = vmov 0.0   ;;  %vm398_vm1 = vcmask 195584  }
  0x38   : > { %2599 = vmatprep.subr.bf16.mxu1 %v2862_v0  ;;  %2493 = vmatprep.mubr.msk.f32.mxu1 %vm2863_vm0, %v2864_v1  ;;  %vm294_vm2 = vcmask 261120   ;;  %v390_v2 = vld [vmem:[%s3423_s3] sm:$0xff]  ;;  %v391_v3 = vld [vmem:[%s3423_s3 + $0x8] sm:$0xff]  ;;  %vm3049_vm3 = vmpackc.low %vm398_vm1, %vm398_vm1  ;;  %vm496_vm5 = vcmask 31744   ;;  %vm581_vm6 = vcmask 64512   ;;  %s2867_s13 = smov 92  }
  0x39   : > { %s283_s16 = scalar_select %p282_p11, %s2945_s25, 1  ;;  %v2600_v5 = vpack.c.bf16 %v391_v3, %v390_v2  ;;  %v290_v6 = vld [vmem:[%s3422_s2] sm:$0xff]  ;;  %v291_v7 = vld [vmem:[%s3422_s2 + $0x8] sm:$0xff]  ;;  %vm3061_vm4 = vmpackc.low %vm294_vm2, %vm294_vm2  ;;  %vm2099_vm7 = vcmask 97280   ;;  %vm2102_vm8 = vcmask 130048   ;;  %vm2105_vm9 = vcmask 162816  }
  0x3a   : > { %v2587_v9 = vpack.c.bf16 %v291_v7, %v290_v6  ;;  %v292_v10 = vld [vmem:[%s3422_s2 + $0x10] sm:$0xff]  ;;  %v293_v11 = vld [vmem:[%s3422_s2 + $0x18] sm:$0xff]  ;;  %v394_v17 = vld [vmem:[%s3423_s3 + $0x20] sm:$0xff]  ;;  %s2868_s8 = smov 116   ;;  %s2869_s11 = smov 112   ;;  %vm2110_vm10 = vcmask 228352  }
  0x3b   : > { %s2395_s18 = sshll.u32 %s283_s16, 4  ;;  %2602 = vmatpush3.bf16.xpose.msk.msra.mxu1 %vm3049_vm3, %v2600_v5  ;;  %v392_v12 = vld [vmem:[%s3423_s3 + $0x10] sm:$0xff]  ;;  %v393_v13 = vld [vmem:[%s3423_s3 + $0x18] sm:$0xff]  ;;  %v2593_v14 = vpack.c.bf16 %v293_v11, %v292_v10  ;;  %v395_v18 = vld [vmem:[%s3423_s3 + $0x28] sm:$0xff]  ;;  %s2870_s14 = smov 108  }
  0x3c   : > { %s286_s29 = scalar_lea.vmem %s3420_s0, %s2395_s18  ;;  %2603 = vmatprep.subr.bf16.mxu1 %v2862_v0  ;;  %2589 = vmatprep.subr.msk.bf16.mxu0 %vm3061_vm4, %v2587_v9  ;;  %v2604_v16 = vpack.c.bf16 %v393_v13, %v392_v12  ;;  %v2608_v19 = vpack.c.bf16 %v395_v18, %v394_v17  ;;  %v396_v21 = vld [vmem:[%s3423_s3 + $0x30] sm:$0xff]  ;;  %v397_v22 = vld [vmem:[%s3423_s3 + $0x38] sm:$0xff]  ;;  %v289_v24 = vld [vmem:[%s3033_s7] sm:$0xff]  ;;  %s2866_s7 = smov 120  }
  0x3d   : > { %v287_v15 = vld [vmem:[%s286_s29] sm:$0xff]  ;;  %2592 = vmatpush3.bf16.xpose.msk.msra.mxu0 %vm3061_vm4, %v2587_v9  ;;  %v288_v20 = vld [vmem:[%s286_s29 + $0x8] sm:$0xff]  ;;  %v2612_v23 = vpack.c.bf16 %v397_v22, %v396_v21  ;;  %s2865_s29 = smov 124   ;;  %s2871_s18 = smov 104  }
  0x3e   : > { %2474 = vmatprep.mubr.msk.f32.mxu0 %vm294_vm2, %v287_v15  ;;  %2595 = vmatprep.subr.msk.bf16.mxu0 %vm3061_vm4, %v2593_v14  ;;  %s2872_s15 = smov 100   ;;  %s2873_s17 = smov 96  }
  0x3f   : > { %s2874_s28 = smov 88   ;;  %s2875_s16 = smov 76  }
  0x40   : > { %s2876_s19 = smov 84   ;;  %s2877_s20 = smov 80  }
  0x41   : > { %s2878_s12 = smov 68   ;;  %p3439_p12 = scmp.ne.s32.totalorder %s3430_s9, 0 }
  0x43   : > { %2606 = vmatpush3.bf16.xpose.msk.msra.mxu1 %vm3049_vm3, %v2604_v16 }
  0x44   : > { %2607 = vmatprep.subr.bf16.mxu1 %v2862_v0 }
  0x45   : > { %2598 = vmatpush3.bf16.xpose.msk.msra.mxu0 %vm3061_vm4, %v2593_v14 }
  0x4b   : > { %2610 = vmatpush3.bf16.xpose.msk.msra.mxu1 %vm3049_vm3, %v2608_v19 }
  0x4c   : > { %2611 = vmatprep.subr.bf16.mxu1 %v2862_v0  ;;  %2475 = vmatmul.mubr.msk.f32.vlgmr.msra.gmra.mrb[0].mxu0 %vm294_vm2, %v288_v20 }
  0x53   : > { %2614 = vmatpush3.bf16.xpose.msk.msra.mxu1 %vm3049_vm3, %v2612_v23 }
  0x5a   : > { %2494 = vmatmul.mubr.msk.f32.vlgmr.msra.gmra.mrb[0].mxu1 %vm398_vm1, %v289_v24 }
 0x11f   : > { %v2476_v25 = vpop.f32.mrb[0].mxu0 }
 0x120   : > { %v3112_v26 = vmul.f32 0.5, %v2476_v25  ;;  %v379_v27 = vpop.f32.mrb[1].mxu0 }
 0x121   : > { %v3114_v28 = vmul.f32 0.5, %v379_v27 }
 0x122   : > { %690 = vrot.lane.b32.xlu1 %v3112_v26, %s2865_s29 }
 0x123   : > { %2498 = vmatprep.mubr.msk.f32.mxu1 %vm496_vm5, %v3114_v28 }
 0x12d   : > { %v3119_v29 = vpop.f32.mrb[0].mxu1 }
 0x12e   : > { %692 = vrot.lane.b32.xlu0 %v3119_v29, %s2865_s29  ;;  %v2495_v30 = vpop.f32.mrb[1].mxu1  ;;  %2496 = vmatprep.subr.msk.mxu1 %vm496_vm5, %v3119_v29 }
 0x12f   : > { %2497 = vmatpush3.xpose.msk.msra.mxu1 %vm496_vm5, %v3119_v29 }
 0x132   : > { %688 = vrot.lane.b32.xlu0 %v3114_v28, %s2865_s29  ;;  %2499 = vmatmul.mubr.msk.f32.vlgmr.msra.gmra.mrb[2].mxu1 %vm496_vm5, %v3112_v26  ;;  %s2879_s29 = smov 4  }
 0x194   : > { %v691_v33 = vpop.permute.xlu1 %690 }
 0x1a0   : > { %v693_v31 = vpop.permute.xlu0 %692 }
 0x1a1   : > { %2506 = vmatprep.subr.msk.mxu0 %vm496_vm5, %v693_v31 }
 0x1a2   : > { %2507 = vmatpush3.xpose.msk.msra.mxu0 %vm496_vm5, %v693_v31 }
 0x1a4   : > { %v689_v32 = vpop.permute.xlu0 %688 }
 0x1a5   : > { %2508 = vmatprep.mubr.msk.f32.mxu0 %vm496_vm5, %v689_v32 }
 0x1a6   : > { %2509 = vmatmul.mubr.msk.f32.vlgmr.msra.gmra.mrb[2].mxu0 %vm496_vm5, %v691_v33 }
 0x205   : > { %v3133_v34 = vpop.f32.mrb[2].mxu1 }
 0x206   : > { %v3135_v35 = vpop.f32.mrb[3].mxu1  ;;  %v585_v52 = vsel %vm581_vm6, %v3133_v34, -inf }
 0x207   : > { %v582_v53 = vsel %vm581_vm6, %v3135_v35, -inf }
 0x279   : > { %v2510_v36 = vpop.f32.mrb[2].mxu0 }
 0x27a   : > { %v766_v37 = vpop.f32.mrb[3].mxu0  ;;  %v778_v38 = vsel %vm581_vm6, %v2510_v36, -inf }
 0x27b   : > { %779 = vmax.xlane.f32.xlu0 %v778_v38  ;;  %v775_v39 = vsel %vm581_vm6, %v766_v37, -inf }
 0x27c   : > { %776 = vmax.xlane.f32.xlu1 %v775_v39 }
 0x28d   : > { %885 = vrot.lane.b32.xlu1 %v3119_v29, %s2866_s7 }
 0x291   : > { %797 = vrot.lane.b32.xlu0 %v3119_v29, %s2867_s13  ;;  %881 = vrot.lane.b32.xlu1 %v3114_v28, %s2866_s7  ;;  %s2881_s13 = smov 8  }
 0x295   : > { %883 = vrot.lane.b32.xlu0 %v3112_v26, %s2866_s7  ;;  %1078 = vrot.lane.b32.xlu1 %v3119_v29, %s2868_s8  ;;  %s2880_s7 = smov 72  }
 0x299   : > { %1074 = vrot.lane.b32.xlu0 %v3114_v28, %s2868_s8  ;;  %1076 = vrot.lane.b32.xlu1 %v3112_v26, %s2868_s8  ;;  %s2325_s8 = sshll.u32 %s3029_s26, 4 }
 0x308   : > { %v780_v40 = vpop.xlane.xlu0 %779 }
 0x309   : > { %v782_v41 = vsub.f32 %v2510_v36, %v780_v40  ;;  %v777_v42 = vpop.xlane.xlu1 %776 }
 0x30a   : > { %v781_v43 = vsub.f32 %v766_v37, %v777_v42 }
 0x30b   : > { %v785_v44 = vmul.f32 1.442695, %v782_v41 }
 0x30c   : > { %v783_v45 = vmul.f32 1.442695, %v781_v43  ;;  %v798_v46 = vpop.permute.xlu0 %797 }
 0x30d   : > { %2699 = vpow2.f32 %v785_v44  ;;  %2511 = vmatprep.subr.mxu0 %v798_v46  ;;  %v886_v47 = vpop.permute.xlu1 %885 }
 0x30e   : > { %2701 = vpow2.f32 %v783_v45  ;;  %2512 = vmatpush3.msra.mxu0 %v798_v46 }
 0x30f   : > { %2516 = vmatprep.subr.msk.mxu0 %vm496_vm5, %v886_v47 }
 0x310   : > { %v884_v56 = vpop.permute.xlu0 %883 }
 0x311   : > { %v882_v54 = vpop.permute.xlu1 %881 }
 0x314   : > { %v1075_v58 = vpop.permute.xlu0 %1074 }
 0x315   : > { %v1079_v55 = vpop.permute.xlu1 %1078 }
 0x317   : > { %v2700_v48 = vpop.eup %2699 }
 0x318   : > { %v2702_v49 = vpop.eup %2701  ;;  %v790_v50 = vsel %vm581_vm6, %v2700_v48, 0.0 }
 0x319   : > { %791 = vadd.xlane.f32.xlu1 %v790_v50  ;;  %v787_v51 = vsel %vm581_vm6, %v2702_v49, 0.0  ;;  %v1077_v57 = vpop.permute.xlu1 %1076 }
 0x31a   : > { %788 = vadd.xlane.f32.xlu0 %v787_v51 }
 0x32a   : > { %1267 = vrot.lane.b32.xlu1 %v3114_v28, %s2869_s11 }
 0x32e   : > { %1464 = vrot.lane.b32.xlu1 %v3119_v29, %s2870_s14 }
 0x330   : > { %1271 = vrot.lane.b32.xlu0 %v3119_v29, %s2869_s11 }
 0x332   : > { %1462 = vrot.lane.b32.xlu1 %v3112_v26, %s2870_s14 }
 0x334   : > { %1269 = vrot.lane.b32.xlu0 %v3112_v26, %s2869_s11 }
 0x336   : > { %1653 = vrot.lane.b32.xlu1 %v3114_v28, %s2871_s18 }
 0x338   : > { %1460 = vrot.lane.b32.xlu0 %v3114_v28, %s2870_s14 }
 0x33a   : > { %1850 = vrot.lane.b32.xlu1 %v3119_v29, %s2872_s15 }
 0x33c   : > { %1657 = vrot.lane.b32.xlu0 %v3119_v29, %s2871_s18 }
 0x33e   : > { %1848 = vrot.lane.b32.xlu1 %v3112_v26, %s2872_s15 }
 0x340   : > { %1655 = vrot.lane.b32.xlu0 %v3112_v26, %s2871_s18  ;;  %s281_s18 = scalar_lea.vmem [#allocation5], %s2325_s8 }
 0x344   : > { %1846 = vrot.lane.b32.xlu0 %v3114_v28, %s2872_s15  ;;  %s2882_s15 = smov 12  }
 0x362   : > { %586 = vmax.xlane.f32.xlu1 %v585_v52 }
 0x363   : > { %583 = vmax.xlane.f32.xlu0 %v582_v53 }
 0x3a6   : > { %v792_v59 = vpop.xlane.xlu1 %791 }
 0x3a7   : > { %2703 = vrcp.f32 %v792_v59  ;;  %v789_v60 = vpop.xlane.xlu0 %788 }
 0x3a8   : > { %2705 = vrcp.f32 %v789_v60 }
 0x3aa   : > { %v1268_v62 = vpop.permute.xlu1 %1267 }
 0x3ab   : > { %v1272_v61 = vpop.permute.xlu0 %1271 }
 0x3ae   : > { %v1465_v4 = vpop.permute.xlu1 %1464 }
 0x3af   : > { %v1270_v1 = vpop.permute.xlu0 %1269 }
 0x3b1   : > { %v2704_v63 = vpop.eup %2703 }
 0x3b2   : > { %v2706_v0 = vpop.eup %2705  ;;  %v796_v3 = vmul.f32 %v2704_v63, %v2700_v48  ;;  %v1463_v6 = vpop.permute.xlu1 %1462 }
 0x3b3   : > { %v795_v2 = vmul.f32 %v2706_v0, %v2702_v49  ;;  %v1461_v5 = vpop.permute.xlu0 %1460 }
 0x3b5   : > { %2513 = vmatprep.mubr.msk.f32.mxu0 %vm581_vm6, %v795_v2 }
 0x3b6   : > { %2514 = vmatmul.mubr.msk.f32.vlgmr.msra.gmra.mrb[4].mxu0 %vm581_vm6, %v796_v3  ;;  %v1654_v9 = vpop.permute.xlu1 %1653 }
 0x3b7   : > { %2517 = vmatpush3.xpose.msk.msra.mxu0 %vm496_vm5, %v886_v47  ;;  %2518 = vmatprep.mubr.msk.f32.mxu0 %vm496_vm5, %v882_v54  ;;  %v1658_v7 = vpop.permute.xlu0 %1657 }
 0x3b8   : > { %2526 = vmatprep.subr.msk.mxu0 %vm496_vm5, %v1079_v55 }
 0x3ba   : > { %2519 = vmatmul.mubr.msk.f32.vlgmr.msra.gmra.mrb[6].mxu0 %vm496_vm5, %v884_v56  ;;  %v1851_v11 = vpop.permute.xlu1 %1850 }
 0x3bb   : > { %2527 = vmatpush3.xpose.msk.msra.mxu0 %vm496_vm5, %v1079_v55  ;;  %2528 = vmatprep.mubr.msk.f32.mxu0 %vm496_vm5, %v1075_v58  ;;  %v1656_v10 = vpop.permute.xlu0 %1655 }
 0x3bc   : > { %2536 = vmatprep.subr.msk.mxu0 %vm496_vm5, %v1272_v61 }
 0x3be   : > { %2529 = vmatmul.mubr.msk.f32.vlgmr.msra.gmra.mrb[8].mxu0 %vm496_vm5, %v1077_v57  ;;  %v1849_v13 = vpop.permute.xlu1 %1848 }
 0x3bf   : > { %2537 = vmatpush3.xpose.msk.msra.mxu0 %vm496_vm5, %v1272_v61  ;;  %2538 = vmatprep.mubr.msk.f32.mxu0 %vm496_vm5, %v1268_v62  ;;  %v1847_v12 = vpop.permute.xlu0 %1846 }
 0x3c0   : > { %2546 = vmatprep.subr.msk.mxu0 %vm496_vm5, %v1465_v4 }
 0x3c2   : > { %2539 = vmatmul.mubr.msk.f32.vlgmr.msra.gmra.mrb[10].mxu0 %vm496_vm5, %v1270_v1 }
 0x3c3   : > { %2547 = vmatpush3.xpose.msk.msra.mxu0 %vm496_vm5, %v1465_v4  ;;  %2548 = vmatprep.mubr.msk.f32.mxu0 %vm496_vm5, %v1461_v5 }
 0x3c4   : > { %2556 = vmatprep.subr.msk.mxu0 %vm496_vm5, %v1658_v7 }
 0x3c6   : > { %2549 = vmatmul.mubr.msk.f32.vlgmr.msra.gmra.mrb[12].mxu0 %vm496_vm5, %v1463_v6 }
 0x3c7   : > { %2557 = vmatpush3.xpose.msk.msra.mxu0 %vm496_vm5, %v1658_v7  ;;  %2558 = vmatprep.mubr.msk.f32.mxu0 %vm496_vm5, %v1654_v9 }
 0x3c8   : > { %2566 = vmatprep.subr.msk.mxu0 %vm496_vm5, %v1851_v11 }
 0x3ca   : > { %2559 = vmatmul.mubr.msk.f32.vlgmr.msra.gmra.mrb[14].mxu0 %vm496_vm5, %v1656_v10 }
 0x3cb   : > { %2567 = vmatpush3.xpose.msk.msra.mxu0 %vm496_vm5, %v1851_v11  ;;  %2568 = vmatprep.mubr.msk.f32.mxu0 %vm496_vm5, %v1847_v12 }
 0x3ce   : > { %2569 = vmatmul.mubr.msk.f32.vlgmr.msra.gmra.mrb[16].mxu0 %vm496_vm5, %v1849_v13 }
 0x3ef   : > { %v587_v24 = vpop.xlane.xlu1 %586 }
 0x3f0   : > { %v584_v16 = vpop.xlane.xlu0 %583  ;;  %v589_v28 = vsub.f32 %v3133_v34, %v587_v24 }
 0x3f1   : > { %v588_v18 = vsub.f32 %v3135_v35, %v584_v16 }
 0x3f2   : > { %v592_v35 = vmul.f32 1.442695, %v589_v28 }
 0x3f3   : > { %v590_v22 = vmul.f32 1.442695, %v588_v18 }
 0x3f5   : > { %2707 = vpow2.f32 %v590_v22 }
 0x3f6   : > { %2709 = vpow2.f32 %v592_v35 }
 0x3ff   : > { %v3222_v42 = vpop.eup %2707 }
 0x400   : > { %v594_v46 = vsel %vm581_vm6, %v3222_v42, 0.0  ;;  %v3234_v48 = vpop.eup %2709 }
 0x401   : > { %v597_v49 = vsel %vm581_vm6, %v3234_v48, 0.0 }
 0x489   : > { %v3190_v14 = vpop.f32.mrb[4].mxu0 }
 0x48a   : > { %v3192_v15 = vpop.f32.mrb[5].mxu0 }
 0x48d   : > { %v3194_v17 = vpop.f32.mrb[6].mxu0 }
 0x48e   : > { %v959_v19 = vpop.f32.mrb[7].mxu0  ;;  %v971_v26 = vsel %vm581_vm6, %v3194_v17, -inf }
 0x48f   : > { %v968_v20 = vsel %vm581_vm6, %v959_v19, -inf }
 0x490   : > { %969 = vmax.xlane.f32.xlu0 %v968_v20 }
 0x491   : > { %v3198_v21 = vpop.f32.mrb[8].mxu0 }
 0x492   : > { %v1152_v23 = vpop.f32.mrb[9].mxu0  ;;  %v1164_v32 = vsel %vm581_vm6, %v3198_v21, -inf }
 0x493   : > { %v1161_v25 = vsel %vm581_vm6, %v1152_v23, -inf }
 0x494   : > { %1162 = vmax.xlane.f32.xlu1 %v1161_v25  ;;  %972 = vmax.xlane.f32.xlu0 %v971_v26 }
 0x495   : > { %v3203_v27 = vpop.f32.mrb[10].mxu0 }
 0x496   : > { %v1345_v30 = vpop.f32.mrb[11].mxu0  ;;  %v1357_v38 = vsel %vm581_vm6, %v3203_v27, -inf }
 0x497   : > { %v1354_v31 = vsel %vm581_vm6, %v1345_v30, -inf }
 0x498   : > { %1355 = vmax.xlane.f32.xlu1 %v1354_v31  ;;  %1165 = vmax.xlane.f32.xlu0 %v1164_v32 }
 0x499   : > { %v3209_v33 = vpop.f32.mrb[12].mxu0 }
 0x49a   : > { %v1538_v36 = vpop.f32.mrb[13].mxu0  ;;  %v1550_v41 = vsel %vm581_vm6, %v3209_v33, -inf }
 0x49b   : > { %v1547_v37 = vsel %vm581_vm6, %v1538_v36, -inf }
 0x49c   : > { %1548 = vmax.xlane.f32.xlu1 %v1547_v37  ;;  %1358 = vmax.xlane.f32.xlu0 %v1357_v38 }
 0x49d   : > { %v3214_v34 = vpop.f32.mrb[14].mxu0 }
 0x49e   : > { %v3216_v39 = vpop.f32.mrb[15].mxu0  ;;  %v1743_v45 = vsel %vm581_vm6, %v3214_v34, -inf }
 0x49f   : > { %v1740_v40 = vsel %vm581_vm6, %v3216_v39, -inf }
 0x4a0   : > { %1741 = vmax.xlane.f32.xlu1 %v1740_v40  ;;  %1551 = vmax.xlane.f32.xlu0 %v1550_v41 }
 0x4a1   : > { %v3224_v43 = vpop.f32.mrb[16].mxu0 }
 0x4a2   : > { %v3226_v44 = vpop.f32.mrb[17].mxu0  ;;  %v1936_v47 = vsel %vm581_vm6, %v3224_v43, -inf }
 0x4a3   : > { %v1933_v50 = vsel %vm581_vm6, %v3226_v44, -inf }
 0x4a4   : > { %1744 = vmax.xlane.f32.xlu0 %v1743_v45  ;;  %595 = vadd.xlane.f32.xlu1 %v594_v46 }
 0x4a8   : > { %1937 = vmax.xlane.f32.xlu0 %v1936_v47 }
 0x4ac   : > { %598 = vadd.xlane.f32.xlu0 %v597_v49 }
 0x4b5   : > { %604 = vrot.lane.b32.xlu1 %v3119_v29, %s2873_s17  ;;  %s2883_s17 = smov 16  }
 0x4c2   : > { %990 = vrot.lane.b32.xlu0 %v3119_v29, %s2874_s28  ;;  %s2884_s28 = smov 20  }
 0x4c6   : > { %1569 = vrot.lane.b32.xlu0 %v3119_v29, %s2875_s16 }
 0x4d9   : > { %1934 = vmax.xlane.f32.xlu1 %v1933_v50 }
 0x4ea   : > { %1183 = vrot.lane.b32.xlu1 %v3119_v29, %s2876_s19 }
 0x4ee   : > { %1376 = vrot.lane.b32.xlu1 %v3119_v29, %s2877_s20  ;;  %s2220_s20 = scalar_lea.sflag [#allocation4], %s3029_s26 }
 0x51d   : > { %v970_v51 = vpop.xlane.xlu0 %969 }
 0x51e   : > { %v974_v52 = vsub.f32 %v959_v19, %v970_v51 }
 0x520   : > { %v976_v53 = vmul.f32 1.442695, %v974_v52 }
 0x521   : > { %v1163_v54 = vpop.xlane.xlu1 %1162  ;;  %v973_v55 = vpop.xlane.xlu0 %972 }
 0x522   : > { %2711 = vpow2.f32 %v976_v53  ;;  %v1167_v56 = vsub.f32 %v1152_v23, %v1163_v54  ;;  %v975_v57 = vsub.f32 %v3194_v17, %v973_v55 }
 0x524   : > { %v1169_v58 = vmul.f32 1.442695, %v1167_v56  ;;  %v978_v59 = vmul.f32 1.442695, %v975_v57 }
 0x525   : > { %v1356_v60 = vpop.xlane.xlu1 %1355  ;;  %v1166_v61 = vpop.xlane.xlu0 %1165 }
 0x526   : > { %2713 = vpow2.f32 %v1169_v58  ;;  %v1360_v62 = vsub.f32 %v1345_v30, %v1356_v60  ;;  %v1168_v63 = vsub.f32 %v3198_v21, %v1166_v61 }
 0x527   : > { %2715 = vpow2.f32 %v978_v59 }
 0x528   : > { %v1362_v0 = vmul.f32 1.442695, %v1360_v62  ;;  %v1171_v1 = vmul.f32 1.442695, %v1168_v63 }
 0x529   : > { %v1549_v2 = vpop.xlane.xlu1 %1548  ;;  %v1359_v3 = vpop.xlane.xlu0 %1358 }
 0x52a   : > { %2717 = vpow2.f32 %v1362_v0  ;;  %v1553_v4 = vsub.f32 %v1538_v36, %v1549_v2  ;;  %v1361_v5 = vsub.f32 %v3203_v27, %v1359_v3 }
 0x52b   : > { %2719 = vpow2.f32 %v1171_v1 }
 0x52c   : > { %v3248_v6 = vpop.eup %2711  ;;  %v1555_v7 = vmul.f32 1.442695, %v1553_v4  ;;  %v1364_v9 = vmul.f32 1.442695, %v1361_v5 }
 0x52d   : > { %v1742_v10 = vpop.xlane.xlu1 %1741  ;;  %v1552_v11 = vpop.xlane.xlu0 %1551  ;;  %v980_v12 = vsel %vm581_vm6, %v3248_v6, 0.0 }
 0x52e   : > { %2721 = vpow2.f32 %v1555_v7  ;;  %v1746_v13 = vsub.f32 %v3216_v39, %v1742_v10  ;;  %v1554_v16 = vsub.f32 %v3209_v33, %v1552_v11  ;;  %981 = vadd.xlane.f32.xlu1 %v980_v12 }
 0x52f   : > { %2723 = vpow2.f32 %v1364_v9 }
 0x530   : > { %v3254_v17 = vpop.eup %2713  ;;  %v1748_v18 = vmul.f32 1.442695, %v1746_v13  ;;  %v1557_v19 = vmul.f32 1.442695, %v1554_v16 }
 0x531   : > { %v3256_v20 = vpop.eup %2715  ;;  %v596_v21 = vpop.xlane.xlu1 %595  ;;  %v1173_v23 = vsel %vm581_vm6, %v3254_v17, 0.0 }
 0x532   : > { %v1745_v22 = vpop.xlane.xlu0 %1744  ;;  %2725 = vpow2.f32 %v1748_v18  ;;  %1174 = vadd.xlane.f32.xlu1 %v1173_v23  ;;  %v983_v25 = vsel %vm581_vm6, %v3256_v20, 0.0 }
 0x533   : > { %v1747_v24 = vsub.f32 %v3214_v34, %v1745_v22  ;;  %2727 = vpow2.f32 %v1557_v19  ;;  %984 = vadd.xlane.f32.xlu0 %v983_v25 }
 0x534   : > { %v3263_v26 = vpop.eup %2717  ;;  %2729 = vrcp.f32 %v596_v21 }
 0x535   : > { %v1750_v27 = vmul.f32 1.442695, %v1747_v24  ;;  %v3265_v28 = vpop.eup %2719  ;;  %v605_v30 = vpop.permute.xlu1 %604  ;;  %v1366_v32 = vsel %vm581_vm6, %v3263_v26, 0.0 }
 0x536   : > { %v1938_v31 = vpop.xlane.xlu0 %1937  ;;  %2501 = vmatprep.subr.mxu1 %v605_v30  ;;  %1367 = vadd.xlane.f32.xlu1 %v1366_v32  ;;  %v1176_v35 = vsel %vm581_vm6, %v3265_v28, 0.0 }
 0x537   : > { %2731 = vpow2.f32 %v1750_v27  ;;  %v1940_v33 = vsub.f32 %v3224_v43, %v1938_v31  ;;  %1177 = vadd.xlane.f32.xlu0 %v1176_v35  ;;  %2502 = vmatpush3.msra.mxu1 %v605_v30 }
 0x538   : > { %v3272_v36 = vpop.eup %2721 }
 0x539   : > { %v1943_v37 = vmul.f32 1.442695, %v1940_v33  ;;  %v3274_v38 = vpop.eup %2723  ;;  %v1559_v39 = vsel %vm581_vm6, %v3272_v36, 0.0 }
 0x53a   : > { %v599_v34 = vpop.xlane.xlu0 %598  ;;  %1560 = vadd.xlane.f32.xlu1 %v1559_v39  ;;  %v1369_v40 = vsel %vm581_vm6, %v3274_v38, 0.0 }
 0x53b   : > { %2733 = vpow2.f32 %v1943_v37  ;;  %1370 = vadd.xlane.f32.xlu0 %v1369_v40 }
 0x53c   : > { %2735 = vrcp.f32 %v599_v34  ;;  %v3280_v41 = vpop.eup %2725 }
 0x53d   : > { %v3282_v43 = vpop.eup %2727  ;;  %v1752_v46 = vsel %vm581_vm6, %v3280_v41, 0.0 }
 0x53e   : > { %v991_v45 = vpop.permute.xlu0 %990  ;;  %v2730_v47 = vpop.eup %2729  ;;  %1753 = vadd.xlane.f32.xlu1 %v1752_v46  ;;  %v1562_v49 = vsel %vm581_vm6, %v3282_v43, 0.0 }
 0x53f   : > { %2521 = vmatprep.subr.mxu1 %v991_v45  ;;  %1563 = vadd.xlane.f32.xlu0 %v1562_v49  ;;  %v602_v50 = vmul.f32 %v2730_v47, %v3222_v42 }
 0x541   : > { %v3289_v51 = vpop.eup %2731  ;;  %2503 = vmatprep.mubr.msk.f32.mxu1 %vm581_vm6, %v602_v50 }
 0x542   : > { %v1755_v52 = vsel %vm581_vm6, %v3289_v51, 0.0  ;;  %v1570_v62 = vpop.permute.xlu0 %1569 }
 0x543   : > { %1756 = vadd.xlane.f32.xlu0 %v1755_v52 }
 0x545   : > { %v3294_v53 = vpop.eup %2733 }
 0x546   : > { %v2736_v54 = vpop.eup %2735  ;;  %v1948_v55 = vsel %vm581_vm6, %v3294_v53, 0.0 }
 0x547   : > { %v603_v56 = vmul.f32 %v2736_v54, %v3234_v48  ;;  %1949 = vadd.xlane.f32.xlu0 %v1948_v55  ;;  %v2116_v54 = vld [vmem:[%s3424_s4 + $0x18] sm:$0xff] }
 0x549   : > { %2504 = vmatmul.mubr.msk.f32.vlgmr.msra.gmra.mrb[4].mxu1 %vm581_vm6, %v603_v56 }
 0x54a   : > { %2522 = vmatpush3.msra.mxu1 %v991_v45 }
 0x55d   : > { %1955 = vrot.lane.b32.xlu0 %v3119_v29, %s2878_s12  ;;  %s2887_s12 = smov [#allocation5]  }
 0x561   : > { %2043 = vrot.lane.b32.xlu0 %v3190_v14, %s2879_s29 }
 0x566   : > { %v1935_v42 = vpop.xlane.xlu1 %1934 }
 0x567   : > { %v1939_v57 = vsub.f32 %v3226_v44, %v1935_v42 }
 0x569   : > { %v1941_v58 = vmul.f32 1.442695, %v1939_v57 }
 0x56a   : > { %v1184_v59 = vpop.permute.xlu1 %1183 }
 0x56b   : > { %2737 = vpow2.f32 %v1941_v58  ;;  %2531 = vmatprep.subr.mxu1 %v1184_v59 }
 0x56e   : > { %v1377_v61 = vpop.permute.xlu1 %1376 }
 0x575   : > { %v3303_v60 = vpop.eup %2737 }
 0x576   : > { %v1945_v48 = vsel %vm581_vm6, %v3303_v60, 0.0 }
 0x577   : > { %1946 = vadd.xlane.f32.xlu1 %v1945_v48 }
 0x588   : > { %1762 = vrot.lane.b32.xlu1 %v3119_v29, %s2880_s7  ;;  %s2886_s7 = smov 28  }
 0x58c   : > { %2041 = vrot.lane.b32.xlu1 %v3192_v15, %s2879_s29  ;;  %s2885_s29 = smov 24  }
 0x5bb   : > { %v982_v14 = vpop.xlane.xlu1 %981 }
 0x5bc   : > { %2739 = vrcp.f32 %v982_v14 }
 0x5bf   : > { %v1175_v44 = vpop.xlane.xlu1 %1174 }
 0x5c0   : > { %2741 = vrcp.f32 %v1175_v44  ;;  %v985_v63 = vpop.xlane.xlu0 %984 }
 0x5c1   : > { %2743 = vrcp.f32 %v985_v63 }
 0x5c3   : > { %v1368_v0 = vpop.xlane.xlu1 %1367 }
 0x5c4   : > { %2745 = vrcp.f32 %v1368_v0  ;;  %v1178_v1 = vpop.xlane.xlu0 %1177 }
 0x5c5   : > { %2747 = vrcp.f32 %v1178_v1 }
 0x5c6   : > { %v2740_v2 = vpop.eup %2739 }
 0x5c7   : > { %v1561_v3 = vpop.xlane.xlu1 %1560  ;;  %v988_v4 = vmul.f32 %v2740_v2, %v3248_v6 }
 0x5c8   : > { %2749 = vrcp.f32 %v1561_v3  ;;  %v1371_v29 = vpop.xlane.xlu0 %1370 }
 0x5c9   : > { %2751 = vrcp.f32 %v1371_v29  ;;  %2523 = vmatprep.mubr.msk.f32.mxu1 %vm581_vm6, %v988_v4 }
 0x5ca   : > { %v2742_v15 = vpop.eup %2741 }
 0x5cb   : > { %v2744_v5 = vpop.eup %2743  ;;  %v1754_v7 = vpop.xlane.xlu1 %1753  ;;  %v1181_v9 = vmul.f32 %v2742_v15, %v3254_v17 }
 0x5cc   : > { %v989_v10 = vmul.f32 %v2744_v5, %v3256_v20  ;;  %2753 = vrcp.f32 %v1754_v7  ;;  %v1564_v11 = vpop.xlane.xlu0 %1563 }
 0x5cd   : > { %2755 = vrcp.f32 %v1564_v11 }
 0x5ce   : > { %v2746_v12 = vpop.eup %2745  ;;  %2524 = vmatmul.mubr.msk.f32.vlgmr.msra.gmra.mrb[6].mxu1 %vm581_vm6, %v989_v10 }
 0x5cf   : > { %v2748_v13 = vpop.eup %2747  ;;  %2532 = vmatpush3.msra.mxu1 %v1184_v59  ;;  %2533 = vmatprep.mubr.msk.f32.mxu1 %vm581_vm6, %v1181_v9  ;;  %v1374_v6 = vmul.f32 %v2746_v12, %v3263_v26 }
 0x5d0   : > { %v1182_v16 = vmul.f32 %v2748_v13, %v3265_v28  ;;  %2541 = vmatprep.subr.mxu1 %v1377_v61  ;;  %v1757_v25 = vpop.xlane.xlu0 %1756 }
 0x5d1   : > { %2757 = vrcp.f32 %v1757_v25 }
 0x5d2   : > { %v2750_v18 = vpop.eup %2749  ;;  %2534 = vmatmul.mubr.msk.f32.vlgmr.msra.gmra.mrb[8].mxu1 %vm581_vm6, %v1182_v16 }
 0x5d3   : > { %v2752_v17 = vpop.eup %2751  ;;  %2542 = vmatpush3.msra.mxu1 %v1377_v61  ;;  %2543 = vmatprep.mubr.msk.f32.mxu1 %vm581_vm6, %v1374_v6  ;;  %v1567_v19 = vmul.f32 %v2750_v18, %v3272_v36 }
 0x5d4   : > { %v1375_v20 = vmul.f32 %v2752_v17, %v3274_v38  ;;  %2551 = vmatprep.subr.mxu1 %v1570_v62  ;;  %v1950_v26 = vpop.xlane.xlu0 %1949 }
 0x5d5   : > { %2759 = vrcp.f32 %v1950_v26 }
 0x5d6   : > { %v2754_v21 = vpop.eup %2753  ;;  %2544 = vmatmul.mubr.msk.f32.vlgmr.msra.gmra.mrb[10].mxu1 %vm581_vm6, %v1375_v20  ;;  %v2383_v20 = vld [vmem:[%s3425_s5] ss:$0 sm:$0xff] }
 0x5d7   : > { %v2756_v22 = vpop.eup %2755  ;;  %2552 = vmatpush3.msra.mxu1 %v1570_v62  ;;  %2553 = vmatprep.mubr.msk.f32.mxu1 %vm581_vm6, %v1567_v19  ;;  %v1760_v23 = vmul.f32 %v2754_v21, %v3280_v41  ;;  %v2113_v41 = vld [vmem:[%s3424_s4] sm:$0xff] }
 0x5d8   : > { %v1568_v24 = vmul.f32 %v2756_v22, %v3282_v43  ;;  %v1956_v32 = vpop.permute.xlu0 %1955  ;;  %v2114_v43 = vld [vmem:[%s3424_s4 + $0x8] sm:$0xff] }
 0x5d9   : > { %v2615_v45 = vpack.c.bf16 %v2114_v43, %v2113_v41 }
 0x5da   : > { %2554 = vmatmul.mubr.msk.f32.vlgmr.msra.gmra.mrb[12].mxu1 %vm581_vm6, %v1568_v24 }
 0x5db   : > { %2563 = vmatprep.mubr.msk.f32.mxu1 %vm581_vm6, %v1760_v23  ;;  %v2758_v28 = vpop.eup %2757  ;;  %2617 = vmatprep.subr.msk.bf16.mxu0 %vm3061_vm4, %v2615_v45 }
 0x5dc   : > { %v1761_v31 = vmul.f32 %v2758_v28, %v3289_v51  ;;  %2620 = vmatpush3.bf16.xpose.msk.msra.mxu0 %vm3061_vm4, %v2615_v45  ;;  %v2044_v59 = vpop.permute.xlu0 %2043 }
 0x5df   : > { %v2760_v33 = vpop.eup %2759 }
 0x5e0   : > { %v1954_v37 = vmul.f32 %v2760_v33, %v3294_v53  ;;  %v2115_v53 = vld [vmem:[%s3424_s4 + $0x10] sm:$0xff] }
 0x5e1   : > { %v2621_v55 = vpack.c.bf16 %v2116_v54, %v2115_v53 }
 0x5e3   : > { %2623 = vmatprep.subr.msk.bf16.mxu0 %vm3061_vm4, %v2621_v55 }
 0x5e4   : > { %2626 = vmatpush3.bf16.xpose.msk.msra.mxu0 %vm3061_vm4, %v2621_v55 }
 0x604   : > { %v1947_v27 = vpop.xlane.xlu1 %1946 }
 0x605   : > { %2761 = vrcp.f32 %v1947_v27 }
 0x608   : > { %v1763_v30 = vpop.permute.xlu1 %1762 }
 0x609   : > { %2561 = vmatprep.subr.mxu1 %v1763_v30 }
 0x60a   : > { %2562 = vmatpush3.msra.mxu1 %v1763_v30 }
 0x60b   : > { %2564 = vmatmul.mubr.msk.f32.vlgmr.msra.gmra.mrb[14].mxu1 %vm581_vm6, %v1761_v31  ;;  %2571 = vmatprep.subr.mxu1 %v1956_v32 }
 0x60c   : > { %2572 = vmatpush3.msra.mxu1 %v1956_v32 }
 0x60f   : > { %v2762_v35 = vpop.eup %2761 }
 0x610   : > { %v1953_v36 = vmul.f32 %v2762_v35, %v3303_v60  ;;  %v2042_v60 = vpop.permute.xlu1 %2041 }
 0x612   : > { %2573 = vmatprep.mubr.msk.f32.mxu1 %vm581_vm6, %v1953_v36 }
 0x613   : > { %2574 = vmatmul.mubr.msk.f32.vlgmr.msra.gmra.mrb[16].mxu1 %vm581_vm6, %v1954_v37 }
 0x61c   : > { %v2505_v38 = vpop.f32.mrb[4].mxu1 }
 0x61d   : > { %v679_v34 = vpop.f32.mrb[5].mxu1  ;;  %v2096_v3 = vsel %vm496_vm5, %v2505_v38, %v2044_v59 }
 0x61e   : > { %v2095_v1 = vsel %vm496_vm5, %v679_v34, %v2042_v60 }
 0x6a1   : > { %v2525_v39 = vpop.f32.mrb[6].mxu1 }
 0x6a2   : > { %2051 = vrot.lane.b32.xlu0 %v2525_v39, %s2881_s13  ;;  %v1065_v40 = vpop.f32.mrb[7].mxu1 }
 0x6a3   : > { %2049 = vrot.lane.b32.xlu1 %v1065_v40, %s2881_s13 }
 0x6a5   : > { %v2535_v46 = vpop.f32.mrb[8].mxu1 }
 0x6a6   : > { %2059 = vrot.lane.b32.xlu0 %v2535_v46, %s2882_s15  ;;  %v1258_v47 = vpop.f32.mrb[9].mxu1 }
 0x6a7   : > { %2057 = vrot.lane.b32.xlu1 %v1258_v47, %s2882_s15  ;;  %s2233_s15 = sshll.u32 %s281_s18, 4  ;;  %s3368_s15 = int_to_ptr.vmem [resolvable:$true] %s2233_s15 }
 0x6a9   : > { %v2545_v49 = vpop.f32.mrb[10].mxu1 }
 0x6aa   : > { %2067 = vrot.lane.b32.xlu0 %v2545_v49, %s2883_s17  ;;  %v1451_v50 = vpop.f32.mrb[11].mxu1 }
 0x6ab   : > { %2065 = vrot.lane.b32.xlu1 %v1451_v50, %s2883_s17  ;;  %s2396_s17 = sshll.u32 %s2945_s25, 8  ;;  %s2793_s25 = scalar_lea.vmem %s3368_s15, 256 }
 0x6ac   : > { %s3373_s19 = scalar_lea.hbm %s3426_s6, %s2396_s17  ;;  %p2794_p6 = scmp.ne.s32.totalorder %s3368_s15, %s2793_s25 }
 0x6ad   : > { %v2555_v51 = vpop.f32.mrb[12].mxu1 }
 0x6ae   : > { %2075 = vrot.lane.b32.xlu0 %v2555_v51, %s2884_s28  ;;  %v1644_v52 = vpop.f32.mrb[13].mxu1  ;;  %p2795_p13 = pnand %p2794_p6, %p3439_p12 }
 0x6af   : > { %2073 = vrot.lane.b32.xlu1 %v1644_v52, %s2884_s28 }
 0x6b0   : > { %p2796_p7 = pneg %p2795_p13 }
 0x6de   : > { %v2565_v56 = vpop.f32.mrb[14].mxu1 }
 0x6df   : > { %2083 = vrot.lane.b32.xlu0 %v2565_v56, %s2885_s29  ;;  %v1837_v42 = vpop.f32.mrb[15].mxu1 }
 0x6e0   : > { %2081 = vrot.lane.b32.xlu1 %v1837_v42, %s2885_s29  ;;  %s2797_s29 = sshll.u32 %s2887_s12, 4  ;;  %s2798_s29 = int_to_ptr.vmem [resolvable:$false] %s2797_s29 }
 0x6e1   : > { %p2800_p10 = scmp.lt.s32.totalorder %s3368_s15, %s2798_s29 }
 0x6e6   : > { %v2575_v57 = vpop.f32.mrb[16].mxu1 }
 0x6e7   : > { %2091 = vrot.lane.b32.xlu0 %v2575_v57, %s2886_s7  ;;  %v2030_v58 = vpop.f32.mrb[17].mxu1 }
 0x6e8   : > { %2089 = vrot.lane.b32.xlu1 %v2030_v58, %s2886_s7  ;;  %s2799_s7 = scalar_lea.vmem %s2798_s29, 512 }
 0x6e9   : > { %p2801_p2 = scmp.lt.s32.totalorder %s2799_s7, %s2793_s25 }
 0x6eb   : > { %p2802_p4 = por %p2801_p2, %p2800_p10 }
 0x6ed   : > { %p2803_p5 = pnand %p2802_p4, %p2796_p7 }
 0x714   : > { %v2052_v48 = vpop.permute.xlu0 %2051 }
 0x715   : > { %v2050_v61 = vpop.permute.xlu1 %2049  ;;  %v2098_v15 = vsel %vm581_vm6, %v2096_v3, %v2052_v48 }
 0x716   : > { %v2097_v4 = vsel %vm581_vm6, %v2095_v1, %v2050_v61 }
 0x718   : > { %v2060_v14 = vpop.permute.xlu0 %2059 }
 0x719   : > { %v2058_v62 = vpop.permute.xlu1 %2057  ;;  %v2101_v7 = vsel %vm2099_vm7, %v2098_v15, %v2060_v14 }
 0x71a   : > { %v2100_v5 = vsel %vm2099_vm7, %v2097_v4, %v2058_v62 }
 0x71c   : > { %v2068_v44 = vpop.permute.xlu0 %2067 }
 0x71d   : > { %v2066_v63 = vpop.permute.xlu1 %2065  ;;  %v2104_v10 = vsel %vm2102_vm8, %v2101_v7, %v2068_v44 }
 0x71e   : > { %v2103_v9 = vsel %vm2102_vm8, %v2100_v5, %v2066_v63 }
 0x720   : > { %v2076_v8 = vpop.permute.xlu0 %2075 }
 0x721   : > { %v2074_v0 = vpop.permute.xlu1 %2073  ;;  %v2107_v13 = vsel %vm2105_vm9, %v2104_v10, %v2076_v8 }
 0x722   : > { %v2106_v11 = vsel %vm2105_vm9, %v2103_v9, %v2074_v0 }
 0x751   : > { %v2084_v2 = vpop.permute.xlu0 %2083 }
 0x752   : > { %v2082_v29 = vpop.permute.xlu1 %2081  ;;  %v2109_v18 = vsel %vm398_vm1, %v2107_v13, %v2084_v2 }
 0x753   : > { %v2108_v6 = vsel %vm398_vm1, %v2106_v11, %v2082_v29 }
 0x759   : > { %v2092_v12 = vpop.permute.xlu0 %2091 }
 0x75a   : > { %v2090_v16 = vpop.permute.xlu1 %2089  ;;  %v2112_v19 = vsel %vm2110_vm10, %v2109_v18, %v2092_v12 }
 0x75b   : > { %v2111_v17 = vsel %vm2110_vm10, %v2108_v6, %v2090_v16 }
 0x75c   : > { %2584 = vmatprep.mubr.msk.f32.mxu0 %vm294_vm2, %v2111_v17 }
 0x75d   : > { %2585 = vmatmul.mubr.msk.f32.vlgmr.msra.gmra.mrb[18].mxu0 %vm294_vm2, %v2112_v19 }
 0x830   : > { %v2586_v21 = vpop.f32.mrb[18].mxu0 }
 0x831   : > { %v2214_v22 = vadd.f32 %v2586_v21, %v2383_v20  ;;  %v2208_v23 = vpop.f32.mrb[19].mxu0 }
 0x832   : > { %v2209_v24 = vadd.f32 %v2383_v20, %v2208_v23 }
 0x833   : > { %2218 = vst.msk [vmem:[%s281_s18 + $0x8] sm:$0xff] %vm294_vm2, %v2214_v22 }
 0x834   : > { %2217 = vst.msk [vmem:[%s281_s18] sm:$0xff] %vm294_vm2, %v2209_v24 }
 0x835   : > { %2806 = shalt.err (!%p2803_p5)
}
 0x836   : > { %s2807_s8 = scalar_lea.hbm %s3373_s19, 256  ;;  %s2811_s18 = scalar_lea.hbm %s3426_s6, 512 }
 0x837   : > { %p2808_p8 = scmp.ne.s32.totalorder %s3373_s19, %s2807_s8  ;;  %p2812_p1 = scmp.lt.u32.totalorder %s3373_s19, %s3426_s6 }
 0x838   : > { %p2813_p3 = scmp.lt.u32.totalorder %s2811_s18, %s2807_s8  ;;  %p2815_p6 = scmp.lt.u32.totalorder %s2807_s8, %s3373_s19 }
 0x839   : > { %p2809_p9 = pnand %p2808_p8, %p3439_p12 }
 0x83a   : > { %p2814_p11 = por %p2813_p3, %p2812_p1 }
 0x83b   : > { %p2810_p0 = pneg %p2809_p9 }
 0x83c   : > { %p2816_p13 = por %p2815_p6, %p2814_p11 }
 0x83e   : > { %p2817_p7 = pnand %p2816_p13, %p2810_p0 }
 0x840   : > { %2820 = shalt.err (!%p2817_p7)
}
 0x841   : > { %s2888_s16 = smov 128  }
 0x842   : > { %2629 = dma.vmem_to_hbm [thread:$0]  (%p3439_p12), %s3368_s15, 256, %s3373_s19, %s2220_s20, %s2888_s16, %s2888_s16, %s2881_s13  }
 0x843 PF: > { %s2248_s25 = sand.u32 1, %s2847_s21   ;;  %p3440_p10 = scmp.ne.s32.totalorder %s3431_s10, 0 }
 0x844   : > { %p3441_p2 = scmp.ge.s32.totalorder %s2859_s24, 2  ;;  %s2249_s12 = scalar_lea.sflag [#allocation4], %s2248_s25 }
 0x846   : > { %p2636_p4 = pnand %p3441_p2, %p3440_p10 }
 0x848   : > { %2842 = dma.done.wait (!%p2636_p4), %s2249_s12, 256  }
 0x849   : > { %2844 = vsyncadd (!%p2636_p4), %s2249_s12, 4294967040  ;;  %p19_p5 = scmp.ge.s32.totalorder %s2949_s27, 4   ;;  %s3442_s21 = smov %s2851_s22 }
 0x84a   : > { %s3443_s22 = smov %s2855_s23  ;;  %s3444_s23 = smov %s2961_s30 }
 0x84b   : > { %s3445_s24 = smov %s2949_s27  ;;  %21 = sbr.rel (!%p19_p5) target bundleno = 5 (0x5), region = 92 }
 0x852   :  { %2254 = vsyncpa [#allocation3], 1 }
 0x853   :  { %2256 = vsyncpa [#allocation3 + $0x1], 1 }
 0x854   :  { %2257 = vsyncpa [#allocation4], 1 }
 0x855   :  { %2259 = vsyncpa [#allocation4 + $0x1], 1 }

</bundles_post_ra>
